<compile_context>
chip_gen: v7x
topology: tpu7x:2x2x1
jax: 0.10.0
libtpu: 0.0.40
codegen_flags: <defaults>
</compile_context>

<pallas_src>
import jax
import jax.numpy as jnp
from jax.experimental import pallas as pl
from jax.experimental.pallas import tpu as pltpu


LANE = 128


def _round_up(x, m):
    return ((x + m - 1) // m) * m


def _pick_row_tile(m):
    """Largest row tile <= 512 that keeps at least 2 grid steps (v7x megacore)
    whenever M is big enough to split; tiny M gets a single small tile."""
    m8 = _round_up(m, 8)
    if m8 <= 16:
        return m8
    tm = 512
    while tm * 2 > m8 and tm > 8:
        tm //= 2
    return max(tm, 8)


def conv1x1_sigmoid_kernel(x_ref, w_ref, b_ref, o_ref):
    # x_ref: (tm, Cin_pad) bf16, w_ref: (Cin_pad, Cout_pad) bf16,
    # b_ref: (1, Cout_pad) f32,  o_ref: (tm, Cout_pad) out_dtype
    y = jnp.dot(x_ref[...], w_ref[...], preferred_element_type=jnp.float32)
    y = y + b_ref[...]
    # sigmoid(y) = 0.5 * tanh(0.5 * y) + 0.5  -> single EUP transcendental.
    o_ref[...] = (jnp.tanh(y * 0.5) * 0.5 + 0.5).astype(o_ref.dtype)


def prepare_conv1x1_params(weight, bias, *, weight_dtype=jnp.bfloat16):
    """One-time parameter prep (do at load time, NOT per call).

    weight: (Cout, Cin, 1, 1), bias: (Cout,)
    Returns (w2d, b2d): (Cin_pad, Cout_pad) in weight_dtype and (1, Cout_pad)
    f32, with Cin padded to 128 (zero rows) and Cout padded to a multiple of
    128 (zero cols).
    """
    Cout, Cin = weight.shape[0], weight.shape[1]
    Cin_pad = _round_up(Cin, LANE)
    Cout_pad = _round_up(Cout, LANE)
    w2d = jnp.transpose(weight.reshape(Cout, Cin), (1, 0))          # (Cin, Cout)
    w2d = jnp.pad(w2d, ((0, Cin_pad - Cin), (0, Cout_pad - Cout)))
    w2d = w2d.astype(weight_dtype)
    b2d = jnp.pad(bias, (0, Cout_pad - Cout)).reshape(1, Cout_pad).astype(jnp.float32)
    return w2d, b2d


def _xla_fastpath(x_nchw, w2d, b2d, cout, out_dtype):
    """Tiny-M path: fused XLA dot+sigmoid, no custom-call overhead."""
    N, Cin, H, W = x_nchw.shape
    x2d = jnp.transpose(x_nchw, (0, 2, 3, 1)).reshape(N * H * W, Cin)
    y = jnp.dot(x2d.astype(w2d.dtype), w2d[:Cin, :cout],
                preferred_element_type=jnp.float32) + b2d[:, :cout]
    y = jax.nn.sigmoid(y).astype(out_dtype)
    return jnp.transpose(y.reshape(N, H, W, cout), (0, 3, 1, 2))


def conv2d_1x1_sigmoid(x_nchw, w2d, b2d, cout, *, out_dtype=None, use_pallas="auto"):
    """x_nchw: (N, Cin, H, W); w2d: (Cin_pad, Cout_pad) prepared; b2d: (1, Cout_pad)."""
    N, Cin, H, W = x_nchw.shape
    Cin_pad, Cout_pad = w2d.shape
    M = N * H * W
    if out_dtype is None:
        out_dtype = x_nchw.dtype

    if use_pallas == "auto":
        # At M<=8 one (8, Cin_pad, Cout_pad) matmul behind ~0.5 MB of weight DMA
        # is pure launch overhead inside a custom call; let XLA fuse it instead.
        use_pallas = M > 8
    if not use_pallas:
        return _xla_fastpath(x_nchw, w2d, b2d, cout, out_dtype)

    # NCHW -> (M, Cin_pad), rows padded to a multiple of the row tile, zero lanes
    # for the Cin padding, bf16 operands for the MXU.
    x2d = jnp.transpose(x_nchw, (0, 2, 3, 1)).reshape(M, Cin)
    tm = _pick_row_tile(M)
    M_pad = _round_up(M, tm)
    x2d = jnp.pad(x2d, ((0, M_pad - M), (0, Cin_pad - Cin))).astype(w2d.dtype)

    grid = (M_pad // tm,)
    out_itemsize = jnp.dtype(out_dtype).itemsize
    cost = pl.CostEstimate(
        flops=2 * M_pad * Cin_pad * Cout_pad,
        transcendentals=M_pad * Cout_pad,
        bytes_accessed=(M_pad * Cin_pad * x2d.dtype.itemsize
                        + Cin_pad * Cout_pad * w2d.dtype.itemsize
                        + Cout_pad * 4
                        + M_pad * Cout_pad * out_itemsize),
    )

    out2d = pl.pallas_call(
        conv1x1_sigmoid_kernel,
        out_shape=jax.ShapeDtypeStruct((M_pad, Cout_pad), out_dtype),
        grid=grid,
        in_specs=[
            pl.BlockSpec((tm, Cin_pad), lambda i: (i, 0)),        # activations tile
            pl.BlockSpec((Cin_pad, Cout_pad), lambda i: (0, 0)),  # weight resident
            pl.BlockSpec((1, Cout_pad), lambda i: (0, 0)),        # bias resident
        ],
        out_specs=pl.BlockSpec((tm, Cout_pad), lambda i: (i, 0)),
        compiler_params=pltpu.CompilerParams(
            dimension_semantics=("parallel",)),
        cost_estimate=cost,
    )(x2d, w2d, b2d)

    # Strip padding and map back to NCHW (degenerate reshapes when H=W=1).
    out2d = out2d[:M, :cout]
    return jnp.transpose(out2d.reshape(N, H, W, cout), (0, 3, 1, 2))


def reference(x_nchw, weight, bias):
    """Pure-JAX f32 reference of Conv2d(1x1) + Sigmoid."""
    Cout, Cin = weight.shape[0], weight.shape[1]
    y = jnp.einsum("nchw,oc->nohw", x_nchw, weight.reshape(Cout, Cin))
    y = y + bias.reshape(1, Cout, 1, 1)
    return jax.nn.sigmoid(y)


if __name__ == "__main__":
    key = jax.random.PRNGKey(0)
    k_x, k_w, k_b, k_x2 = jax.random.split(key, 4)

    # Module's forward: x535 is [1, 76, 1, 1], Cout = 1824.
    N, Cin, H, W = 1, 76, 1, 1
    Cout = 1824

    x = jax.random.normal(k_x, (N, Cin, H, W), dtype=jnp.float32)

    # PyTorch-style uniform(-1/sqrt(fan_in), +1/sqrt(fan_in)) init.
    bound = 1.0 / jnp.sqrt(jnp.float32(Cin))
    weight = jax.random.uniform(k_w, (Cout, Cin, 1, 1), dtype=jnp.float32,
                                minval=-bound, maxval=bound)
    bias = jax.random.uniform(k_b, (Cout,), dtype=jnp.float32,
                              minval=-bound, maxval=bound)

    # One-time parameter prep (transpose + pad + bf16 cast) — outside the hot path.
    w2d, b2d = prepare_conv1x1_params(weight, bias, weight_dtype=jnp.bfloat16)

    ref = reference(x, weight, bias)

    # 1) Pallas kernel forced at the exact module shape (proves it compiles/runs).
    out_pallas = conv2d_1x1_sigmoid(x, w2d, b2d, Cout, use_pallas=True)
    out_pallas = jax.block_until_ready(out_pallas)
    assert out_pallas.shape == (N, Cout, H, W), out_pallas.shape
    assert jnp.allclose(out_pallas, ref, atol=5e-3, rtol=5e-3), \
        "pallas path mismatch vs reference"

    # 2) Production config ("auto"): tiny-M fast path (no custom-call overhead).
    out_auto = conv2d_1x1_sigmoid(x, w2d, b2d, Cout)
    out_auto = jax.block_until_ready(out_auto)
    assert jnp.allclose(out_auto, ref, atol=5e-3, rtol=5e-3), \
        "fast path mismatch vs reference"

    # 3) Larger spatial shape to exercise the gridded (>=2 steps) pipelined path
    #    with bf16 output stores (the dominant HBM stream at large M).
    N2, H2, W2 = 2, 8, 8                          # M = 128 -> tm=64, grid=2
    x_big = jax.random.normal(k_x2, (N2, Cin, H2, W2), dtype=jnp.float32)
    ref_big = reference(x_big, weight, bias)
    out_big = conv2d_1x1_sigmoid(x_big, w2d, b2d, Cout,
                                 out_dtype=jnp.bfloat16, use_pallas=True)
    out_big = jax.block_until_ready(out_big)
    assert out_big.shape == (N2, Cout, H2, W2), out_big.shape
    assert jnp.allclose(out_big.astype(jnp.float32), ref_big,
                        atol=1e-2, rtol=1e-2), "large-M path mismatch vs reference"

    print("KERNEL_OK")
</pallas_src>

<mosaic_0001>
module attributes {stable_mosaic.version = 11 : i64} {
  func.func @conv1x1_sigmoid_kernel(%arg0: i32, %arg1: memref<8x128xbf16, #tpu.memory_space<vmem>>, %arg2: memref<128x1920xbf16, #tpu.memory_space<vmem>>, %arg3: memref<1x1920xf32, #tpu.memory_space<vmem>>, %arg4: memref<8x1920xf32, #tpu.memory_space<vmem>>) attributes {dimension_semantics = [#tpu.dimension_semantics<parallel>], iteration_bounds = array<i64: 1>, scalar_prefetch = 0 : i64, scratch_operands = 0 : i64, tpu.core_type = #tpu.core_type<tc>, window_params = [{transform_indices = @transform_0, window_bounds = array<i64: 8, 128>}, {pipeline_mode = #tpu.pipeline_mode<synchronous>, transform_indices = @transform_1, window_bounds = array<i64: 128, 1920>}, {pipeline_mode = #tpu.pipeline_mode<synchronous>, transform_indices = @transform_2, window_bounds = array<i64: 1, 1920>}, {transform_indices = @transform_3, window_bounds = array<i64: 8, 1920>}]} {
    %c0 = arith.constant 0 : index
    %c0_0 = arith.constant 0 : index
    %0 = vector.load %arg1[%c0, %c0_0] : memref<8x128xbf16, #tpu.memory_space<vmem>>, vector<8x128xbf16>
    %c0_1 = arith.constant 0 : index
    %c0_2 = arith.constant 0 : index
    %1 = vector.load %arg2[%c0_1, %c0_2] : memref<128x1920xbf16, #tpu.memory_space<vmem>>, vector<128x1920xbf16>
    %cst = arith.constant dense<0.000000e+00> : vector<8x1920xf32>
    %2 = tpu.matmul %0, %1, %cst {dimension_numbers = #tpu.dot_dimension_numbers<[1], [0], [0], [1], [0, 0, 1, 1], [], []>} : vector<8x128xbf16>, vector<128x1920xbf16>, vector<8x1920xf32> -> vector<8x1920xf32>
    %c0_3 = arith.constant 0 : index
    %c0_4 = arith.constant 0 : index
    %3 = vector.load %arg3[%c0_3, %c0_4] : memref<1x1920xf32, #tpu.memory_space<vmem>>, vector<1x1920xf32>
    %4 = vector.broadcast %3 : vector<1x1920xf32> to vector<8x1920xf32>
    %5 = arith.addf %2, %4 : vector<8x1920xf32>
    %cst_5 = arith.constant 5.000000e-01 : f32
    %6 = vector.broadcast %cst_5 : f32 to vector<8x1920xf32>
    %7 = arith.mulf %5, %6 : vector<8x1920xf32>
    %8 = math.tanh %7 : vector<8x1920xf32>
    %cst_6 = arith.constant 5.000000e-01 : f32
    %9 = vector.broadcast %cst_6 : f32 to vector<8x1920xf32>
    %10 = arith.mulf %8, %9 : vector<8x1920xf32>
    %cst_7 = arith.constant 5.000000e-01 : f32
    %11 = vector.broadcast %cst_7 : f32 to vector<8x1920xf32>
    %12 = arith.addf %10, %11 : vector<8x1920xf32>
    %c0_8 = arith.constant 0 : index
    %c0_9 = arith.constant 0 : index
    %13 = vector.load %arg4[%c0_8, %c0_9] : memref<8x1920xf32, #tpu.memory_space<vmem>>, vector<8x1920xf32>
    tpu.vector_store %arg4[%c0_8, %c0_9], %12 {strides = array<i32>} : memref<8x1920xf32, #tpu.memory_space<vmem>>, vector<8x1920xf32>,
    return
  }
  func.func @transform_0(%arg0: i32) -> (i32, i32) {
    %c0_i32 = arith.constant 0 : i32
    %c0_i32_0 = arith.constant 0 : i32
    return %arg0, %c0_i32 : i32, i32
  }
  func.func @transform_1(%arg0: i32) -> (i32, i32) {
    %c0_i32 = arith.constant 0 : i32
    %c0_i32_0 = arith.constant 0 : i32
    %c0_i32_1 = arith.constant 0 : i32
    return %c0_i32, %c0_i32_0 : i32, i32
  }
  func.func @transform_2(%arg0: i32) -> (i32, i32) {
    %c0_i32 = arith.constant 0 : i32
    %c0_i32_0 = arith.constant 0 : i32
    %c0_i32_1 = arith.constant 0 : i32
    return %c0_i32, %c0_i32_0 : i32, i32
  }
  func.func @transform_3(%arg0: i32) -> (i32, i32) {
    %c0_i32 = arith.constant 0 : i32
    %c0_i32_0 = arith.constant 0 : i32
    return %arg0, %c0_i32 : i32, i32
  }
}

</mosaic_0001>

<bundles_post_ra>
// kernel: tpu_custom_call.1
= control target key start
LH: loop header
LB: loop body
LE: loop exit
PB: predicated region body
PF: predicated region fallthrough
CT: control target
= control target key end

     0   :  { %8 = vsyncpa [#allocation3], 0  ;;  %s1877_s0 = inlined_call_operand.hbm [shape: bf16[8,128], index: 0, kind: input, shape index: {}]   ;;  %s1878_s1 = inlined_call_operand.hbm [shape: bf16[128,1920], index: 1, kind: input, shape index: {}]   ;;  %s1879_s2 = inlined_call_operand.hbm [shape: f32[1,1920], index: 2, kind: input, shape index: {}]   ;;  %s1880_s3 = inlined_call_operand.hbm [shape: f32[8,1920], index: 3, kind: output, shape index: {}]  }
   0x1   :  { %9 = vsyncpa [#allocation6], 0 }
   0x2   :  { %10 = vsyncpa [#allocation4], 0  ;;  %s1745_s12 = smov [#allocation5]   ;;  %s1651_s16 = scalar_lea.hbm %s1878_s1, 15360 }
   0x3   :  { %s26_s13 = sshll.u32 %s1745_s12, 4  ;;  %p1652_p0 = scmp.ne.s32.totalorder %s1878_s1, %s1651_s16  ;;  %s27_s13 = int_to_ptr.vmem [resolvable:$true] %s26_s13 }
   0x4   :  { %p1655_p1 = scmp.lt.u32.totalorder %s1651_s16, %s1878_s1 }
   0x6   :  { %p1657_p2 = pnand %p1655_p1, %p1652_p0 }
   0x8   :  { %1660 = shalt.err (!%p1657_p2)
}
   0x9   :  { %s1661_s21 = scalar_lea.vmem %s27_s13, 15360  ;;  %p1666_p4 = scmp.lt.s32.totalorder %s27_s13, %s27_s13 }
   0xa   :  { %p1662_p3 = scmp.ne.s32.totalorder %s27_s13, %s1661_s21  ;;  %p1667_p5 = scmp.lt.s32.totalorder %s1661_s21, %s1661_s21 }
   0xc   :  { %p1668_p6 = por %p1667_p5, %p1666_p4 }
   0xe   :  { %p1669_p7 = pnand %p1668_p6, %p1662_p3 }
  0x10   :  { %1672 = shalt.err (!%p1669_p7)
}
  0x11   :  { %s1746_s22 = smov 960   ;;  %s1747_s23 = smov 60  }
  0x12   :  { %32 = dma.hbm_to_vmem [thread:$0]  %s1878_s1, 15360, %s27_s13, [#allocation6], %s1746_s22, %s1746_s22, %s1747_s23  }
  0x13   :  { %s1748_s26 = smov [#allocation2]   ;;  %s1749_s28 = smov [#allocation7]  }
  0x14   :  { %s17_s27 = sshll.u32 %s1748_s26, 4  ;;  %s39_s29 = sshll.u32 %s1749_s28, 4  ;;  %s18_s27 = int_to_ptr.vmem [resolvable:$true] %s17_s27  ;;  %s40_s29 = int_to_ptr.vmem [resolvable:$true] %s39_s29 }
  0x15   :  { %s1673_s5 = scalar_lea.hbm %s1877_s0, 64 }
  0x16   :  { %p1674_p8 = scmp.ne.s32.totalorder %s1877_s0, %s1673_s5  ;;  %p1677_p9 = scmp.lt.u32.totalorder %s1673_s5, %s1877_s0 }
  0x18   :  { %p1679_p10 = pnand %p1677_p9, %p1674_p8 }
  0x1a   :  { %1682 = shalt.err (!%p1679_p10)
}
  0x1b   :  { %s1683_s1 = scalar_lea.vmem %s18_s27, 64  ;;  %p1688_p12 = scmp.lt.s32.totalorder %s18_s27, %s18_s27 }
  0x1c   :  { %p1684_p11 = scmp.ne.s32.totalorder %s18_s27, %s1683_s1  ;;  %p1689_p13 = scmp.lt.s32.totalorder %s1683_s1, %s1683_s1 }
  0x1e   :  { %p1690_p0 = por %p1689_p13, %p1688_p12 }
  0x20   :  { %p1691_p1 = pnand %p1690_p0, %p1684_p11 }
  0x22   :  { %1694 = shalt.err (!%p1691_p1)
}
  0x23   :  { %20 = dma.hbm_to_vmem [thread:$0]  %s1877_s0, 64, %s18_s27, [#allocation3]  }
  0x24   :  { %s1695_s14 = scalar_lea.hbm %s1879_s2, 240 }
  0x25   :  { %p1696_p2 = scmp.ne.s32.totalorder %s1879_s2, %s1695_s14  ;;  %p1699_p3 = scmp.lt.u32.totalorder %s1695_s14, %s1879_s2 }
  0x27   :  { %p1701_p4 = pnand %p1699_p3, %p1696_p2 }
  0x29   :  { %1704 = shalt.err (!%p1701_p4)
}
  0x2a   :  { %s1705_s19 = scalar_lea.vmem %s40_s29, 240  ;;  %s1709_s20 = scalar_lea.vmem %s40_s29, 256 }
  0x2b   :  { %p1706_p5 = scmp.ne.s32.totalorder %s40_s29, %s1705_s19  ;;  %p1710_p6 = scmp.lt.s32.totalorder %s40_s29, %s40_s29 }
  0x2c   :  { %p1711_p7 = scmp.lt.s32.totalorder %s1709_s20, %s1705_s19 }
  0x2e   :  { %p1712_p8 = por %p1711_p7, %p1710_p6 }
  0x30   :  { %p1713_p9 = pnand %p1712_p8, %p1706_p5 }
  0x32   :  { %1716 = shalt.err (!%p1713_p9)
}
  0x33   :  { %42 = dma.hbm_to_vmem [thread:$0]  %s1879_s2, 240, %s40_s29, [#allocation6]  }
  0x34   :  { %1739 = dma.done.wait [#allocation3], 64  }
  0x35   :  { %1740 = vsyncadd [#allocation3], 4294967232 }
  0x36   :  { %1741 = dma.done.wait [#allocation6], 15600  }
  0x37   :  { %1742 = vsyncadd [#allocation6], 4294951696  ;;  %v1750_v0 = vmov 0   ;;  %v1445_v1 = vld [vmem:[#allocation5 + $0x4] ss:$60 sps:$4 sm:$0xff]   ;;  %vm1752_vm0 = vmmov 0  }
  0x38   :  { %901 = vmatprep.mubr.bf16.mxu0 %v1750_v0  ;;  %942 = vmatprep.mubr.bf16.mxu1 %v1750_v0  ;;  %v1447_v2 = vld [vmem:[#allocation5 + $0xc] ss:$60 sps:$4 sm:$0xff]   ;;  %v1449_v3 = vld [vmem:[#allocation5] ss:$60 sps:$4 sm:$0xff]   ;;  %v1455_v7 = vld [vmem:[#allocation5 + $0x78] ss:$60 sps:$4 sm:$0xff]  }
  0x39   :  { %869 = vmatprep.subr.bf16.mxu0 %v1445_v1  ;;  %v1450_v4 = vld [vmem:[#allocation5 + $0x8] ss:$60 sps:$4 sm:$0xff]   ;;  %910 = vmatprep.subr.bf16.mxu1 %v1447_v2  ;;  %v1451_v5 = vld [vmem:[#allocation5 + $0x7c] ss:$60 sps:$4 sm:$0xff]   ;;  %v1457_v9 = vld [vmem:[#allocation5 + $0xf4] ss:$60 sps:$4 sm:$0xff]  }
  0x3a   :  { %870 = vmatpush1.bf16.msra.mxu0 %v1449_v3  ;;  %911 = vmatpush1.bf16.msra.mxu1 %v1450_v4  ;;  %v1453_v6 = vld [vmem:[#allocation5 + $0x84] ss:$60 sps:$4 sm:$0xff]   ;;  %v1459_v10 = vld [vmem:[#allocation5 + $0xfc] ss:$60 sps:$4 sm:$0xff]   ;;  %v1461_v11 = vld [vmem:[#allocation5 + $0xf0] ss:$60 sps:$4 sm:$0xff]  }
  0x3b   :  { %871 = vmatprep.subr.bf16.mxu0 %v1451_v5  ;;  %v1456_v8 = vld [vmem:[#allocation5 + $0x80] ss:$60 sps:$4 sm:$0xff]   ;;  %912 = vmatprep.subr.bf16.mxu1 %v1453_v6  ;;  %v1462_v12 = vld [vmem:[#allocation5 + $0xf8] ss:$60 sps:$4 sm:$0xff]   ;;  %v1463_v13 = vld [vmem:[#allocation5 + $0x16c] ss:$60 sps:$4 sm:$0xff]  }
  0x3c   :  { %v1465_v14 = vld [vmem:[#allocation5 + $0x174] ss:$60 sps:$4 sm:$0xff]   ;;  %v1467_v15 = vld [vmem:[#allocation5 + $0x168] ss:$60 sps:$4 sm:$0xff]   ;;  %v1473_v19 = vld [vmem:[#allocation5 + $0x1e0] ss:$60 sps:$4 sm:$0xff]  }
  0x3d   :  { %v1468_v16 = vld [vmem:[#allocation5 + $0x170] ss:$60 sps:$4 sm:$0xff]   ;;  %v1469_v17 = vld [vmem:[#allocation5 + $0x1e4] ss:$60 sps:$4 sm:$0xff]   ;;  %v1475_v21 = vld [vmem:[#allocation5 + $0x25c] ss:$60 sps:$4 sm:$0xff]  }
  0x3e   :  { %872 = vmatpush1.bf16.msra.mxu0 %v1455_v7  ;;  %913 = vmatpush1.bf16.msra.mxu1 %v1456_v8  ;;  %v1471_v18 = vld [vmem:[#allocation5 + $0x1ec] ss:$60 sps:$4 sm:$0xff]   ;;  %v1477_v22 = vld [vmem:[#allocation5 + $0x264] ss:$60 sps:$4 sm:$0xff]   ;;  %v1479_v23 = vld [vmem:[#allocation5 + $0x258] ss:$60 sps:$4 sm:$0xff]  }
  0x3f   :  { %873 = vmatprep.subr.bf16.mxu0 %v1457_v9  ;;  %914 = vmatprep.subr.bf16.mxu1 %v1459_v10  ;;  %v1474_v20 = vld [vmem:[#allocation5 + $0x1e8] ss:$60 sps:$4 sm:$0xff]   ;;  %v1480_v24 = vld [vmem:[#allocation5 + $0x260] ss:$60 sps:$4 sm:$0xff]   ;;  %v1481_v25 = vld [vmem:[#allocation5 + $0x2d4] ss:$60 sps:$4 sm:$0xff]  }
  0x40   :  { %v1483_v26 = vld [vmem:[#allocation5 + $0x2dc] ss:$60 sps:$4 sm:$0xff]   ;;  %v1485_v27 = vld [vmem:[#allocation5 + $0x2d0] ss:$60 sps:$4 sm:$0xff]   ;;  %v1491_v31 = vld [vmem:[#allocation5 + $0x348] ss:$60 sps:$4 sm:$0xff]  }
  0x41   :  { %v1486_v28 = vld [vmem:[#allocation5 + $0x2d8] ss:$60 sps:$4 sm:$0xff]   ;;  %v1487_v29 = vld [vmem:[#allocation5 + $0x34c] ss:$60 sps:$4 sm:$0xff]   ;;  %v1812_v35 = vld [vmem:[#allocation2] sm:$0xf] }
  0x42   :  { %874 = vmatpush1.bf16.msra.mxu0 %v1461_v11  ;;  %915 = vmatpush1.bf16.msra.mxu1 %v1462_v12  ;;  %v1489_v30 = vld [vmem:[#allocation5 + $0x354] ss:$60 sps:$4 sm:$0xff]   ;;  %v1498_v34 = vld [vmem:[#allocation5 + $0x1c] ss:$60 sps:$4 sm:$0xff]   ;;  %v1501_v38 = vld [vmem:[#allocation5 + $0x8c] ss:$60 sps:$4 sm:$0xff]  }
  0x43   :  { %875 = vmatprep.subr.bf16.mxu0 %v1463_v13  ;;  %916 = vmatprep.subr.bf16.mxu1 %v1465_v14  ;;  %v1492_v32 = vld [vmem:[#allocation5 + $0x350] ss:$60 sps:$4 sm:$0xff]   ;;  %v1496_v37 = vld [vmem:[#allocation5 + $0x18] ss:$60 sps:$4 sm:$0xff]   ;;  %v1499_v40 = vld [vmem:[#allocation5 + $0x88] ss:$60 sps:$4 sm:$0xff]  }
  0x44   :  { %v1495_v33 = vld [vmem:[#allocation5 + $0x14] ss:$60 sps:$4 sm:$0xff]   ;;  %v1507_v42 = vld [vmem:[#allocation5 + $0x104] ss:$60 sps:$4 sm:$0xff]   ;;  %v1510_v43 = vld [vmem:[#allocation5 + $0x10c] ss:$60 sps:$4 sm:$0xff]  }
  0x45   :  { %v1493_v36 = vld [vmem:[#allocation5 + $0x10] ss:$60 sps:$4 sm:$0xff]   ;;  %v1505_v44 = vld [vmem:[#allocation5 + $0x100] ss:$60 sps:$4 sm:$0xff]   ;;  %v1508_v45 = vld [vmem:[#allocation5 + $0x108] ss:$60 sps:$4 sm:$0xff]  }
  0x46   :  { %876 = vmatpush1.bf16.msra.mxu0 %v1467_v15  ;;  %917 = vmatpush1.bf16.msra.mxu1 %v1468_v16  ;;  %v1504_v39 = vld [vmem:[#allocation5 + $0x94] ss:$60 sps:$4 sm:$0xff]   ;;  %v1513_v46 = vld [vmem:[#allocation5 + $0x17c] ss:$60 sps:$4 sm:$0xff]   ;;  %v1516_v47 = vld [vmem:[#allocation5 + $0x184] ss:$60 sps:$4 sm:$0xff]  }
  0x47   :  { %877 = vmatprep.subr.bf16.mxu0 %v1469_v17  ;;  %918 = vmatprep.subr.bf16.mxu1 %v1471_v18  ;;  %v1502_v41 = vld [vmem:[#allocation5 + $0x90] ss:$60 sps:$4 sm:$0xff]   ;;  %v1511_v48 = vld [vmem:[#allocation5 + $0x178] ss:$60 sps:$4 sm:$0xff]   ;;  %v1514_v49 = vld [vmem:[#allocation5 + $0x180] ss:$60 sps:$4 sm:$0xff]  }
  0x48   :  { %v1519_v50 = vld [vmem:[#allocation5 + $0x1f4] ss:$60 sps:$4 sm:$0xff]   ;;  %v1522_v51 = vld [vmem:[#allocation5 + $0x1fc] ss:$60 sps:$4 sm:$0xff]   ;;  %v1525_v54 = vld [vmem:[#allocation5 + $0x26c] ss:$60 sps:$4 sm:$0xff]  }
  0x49   :  { %v1517_v52 = vld [vmem:[#allocation5 + $0x1f0] ss:$60 sps:$4 sm:$0xff]   ;;  %v1520_v53 = vld [vmem:[#allocation5 + $0x1f8] ss:$60 sps:$4 sm:$0xff]   ;;  %v1523_v56 = vld [vmem:[#allocation5 + $0x268] ss:$60 sps:$4 sm:$0xff]  }
  0x4a   :  { %878 = vmatpush1.bf16.msra.mxu0 %v1473_v19  ;;  %919 = vmatpush1.bf16.msra.mxu1 %v1474_v20  ;;  %v1528_v55 = vld [vmem:[#allocation5 + $0x274] ss:$60 sps:$4 sm:$0xff]   ;;  %v1531_v58 = vld [vmem:[#allocation5 + $0x2e4] ss:$60 sps:$4 sm:$0xff]   ;;  %v1534_v59 = vld [vmem:[#allocation5 + $0x2ec] ss:$60 sps:$4 sm:$0xff]  }
  0x4b   :  { %879 = vmatprep.subr.bf16.mxu0 %v1475_v21  ;;  %920 = vmatprep.subr.bf16.mxu1 %v1477_v22  ;;  %v1526_v57 = vld [vmem:[#allocation5 + $0x270] ss:$60 sps:$4 sm:$0xff]   ;;  %v1529_v60 = vld [vmem:[#allocation5 + $0x2e0] ss:$60 sps:$4 sm:$0xff]   ;;  %v1532_v61 = vld [vmem:[#allocation5 + $0x2e8] ss:$60 sps:$4 sm:$0xff]  }
  0x4c   :  { %v1537_v62 = vld [vmem:[#allocation5 + $0x35c] ss:$60 sps:$4 sm:$0xff]   ;;  %v1540_v63 = vld [vmem:[#allocation5 + $0x364] ss:$60 sps:$4 sm:$0xff]   ;;  %v1546_v4 = vld [vmem:[#allocation5 + $0x2c] ss:$60 sps:$4 sm:$0xff]  }
  0x4d   :  { %v1535_v1 = vld [vmem:[#allocation5 + $0x358] ss:$60 sps:$4 sm:$0xff]   ;;  %v1538_v2 = vld [vmem:[#allocation5 + $0x360] ss:$60 sps:$4 sm:$0xff]   ;;  %v1544_v6 = vld [vmem:[#allocation5 + $0x28] ss:$60 sps:$4 sm:$0xff]  }
  0x4e   :  { %880 = vmatpush1.bf16.msra.mxu0 %v1479_v23  ;;  %921 = vmatpush1.bf16.msra.mxu1 %v1480_v24  ;;  %v1543_v3 = vld [vmem:[#allocation5 + $0x24] ss:$60 sps:$4 sm:$0xff]   ;;  %v1549_v7 = vld [vmem:[#allocation5 + $0x9c] ss:$60 sps:$4 sm:$0xff]   ;;  %v1555_v11 = vld [vmem:[#allocation5 + $0x114] ss:$60 sps:$4 sm:$0xff]  }
  0x4f   :  { %881 = vmatprep.subr.bf16.mxu0 %v1481_v25  ;;  %922 = vmatprep.subr.bf16.mxu1 %v1483_v26  ;;  %v1541_v5 = vld [vmem:[#allocation5 + $0x20] ss:$60 sps:$4 sm:$0xff]   ;;  %v1547_v9 = vld [vmem:[#allocation5 + $0x98] ss:$60 sps:$4 sm:$0xff]   ;;  %v1553_v13 = vld [vmem:[#allocation5 + $0x110] ss:$60 sps:$4 sm:$0xff]  }
  0x50   :  { %v1552_v8 = vld [vmem:[#allocation5 + $0xa4] ss:$60 sps:$4 sm:$0xff]   ;;  %v1558_v12 = vld [vmem:[#allocation5 + $0x11c] ss:$60 sps:$4 sm:$0xff]   ;;  %v1561_v15 = vld [vmem:[#allocation5 + $0x18c] ss:$60 sps:$4 sm:$0xff]  }
  0x51   :  { %v1550_v10 = vld [vmem:[#allocation5 + $0xa0] ss:$60 sps:$4 sm:$0xff]   ;;  %v1556_v14 = vld [vmem:[#allocation5 + $0x118] ss:$60 sps:$4 sm:$0xff]   ;;  %v1559_v17 = vld [vmem:[#allocation5 + $0x188] ss:$60 sps:$4 sm:$0xff]  }
  0x52   :  { %882 = vmatpush1.bf16.msra.mxu0 %v1485_v27  ;;  %923 = vmatpush1.bf16.msra.mxu1 %v1486_v28  ;;  %v1564_v16 = vld [vmem:[#allocation5 + $0x194] ss:$60 sps:$4 sm:$0xff]   ;;  %v1567_v19 = vld [vmem:[#allocation5 + $0x204] ss:$60 sps:$4 sm:$0xff]   ;;  %v1570_v20 = vld [vmem:[#allocation5 + $0x20c] ss:$60 sps:$4 sm:$0xff]  }
  0x53   :  { %883 = vmatprep.subr.bf16.mxu0 %v1487_v29  ;;  %924 = vmatprep.subr.bf16.mxu1 %v1489_v30  ;;  %v1562_v18 = vld [vmem:[#allocation5 + $0x190] ss:$60 sps:$4 sm:$0xff]   ;;  %v1565_v21 = vld [vmem:[#allocation5 + $0x200] ss:$60 sps:$4 sm:$0xff]   ;;  %v1568_v22 = vld [vmem:[#allocation5 + $0x208] ss:$60 sps:$4 sm:$0xff]  }
  0x54   :  { %v1573_v23 = vld [vmem:[#allocation5 + $0x27c] ss:$60 sps:$4 sm:$0xff]   ;;  %v1576_v24 = vld [vmem:[#allocation5 + $0x284] ss:$60 sps:$4 sm:$0xff]   ;;  %v1579_v27 = vld [vmem:[#allocation5 + $0x2f4] ss:$60 sps:$4 sm:$0xff]  }
  0x55   :  { %v1571_v25 = vld [vmem:[#allocation5 + $0x278] ss:$60 sps:$4 sm:$0xff]   ;;  %v1574_v26 = vld [vmem:[#allocation5 + $0x280] ss:$60 sps:$4 sm:$0xff]   ;;  %v1577_v29 = vld [vmem:[#allocation5 + $0x2f0] ss:$60 sps:$4 sm:$0xff]  }
  0x56   :  { %884 = vmatpush1.bf16.msra.mxu0 %v1491_v31  ;;  %925 = vmatpush1.bf16.msra.mxu1 %v1492_v32  ;;  %v1582_v28 = vld [vmem:[#allocation5 + $0x2fc] ss:$60 sps:$4 sm:$0xff]   ;;  %v1585_v31 = vld [vmem:[#allocation5 + $0x36c] ss:$60 sps:$4 sm:$0xff]   ;;  %v1588_v32 = vld [vmem:[#allocation5 + $0x374] ss:$60 sps:$4 sm:$0xff]  }
  0x57   :  { %951 = vmatprep.subr.bf16.mxu0 %v1495_v33  ;;  %992 = vmatprep.subr.bf16.mxu1 %v1498_v34  ;;  %v1580_v30 = vld [vmem:[#allocation5 + $0x2f8] ss:$60 sps:$4 sm:$0xff]   ;;  %v1583_v33 = vld [vmem:[#allocation5 + $0x368] ss:$60 sps:$4 sm:$0xff]   ;;  %v1586_v34 = vld [vmem:[#allocation5 + $0x370] ss:$60 sps:$4 sm:$0xff]  }
  0x58   :  { %s1753_s2 = smov [#allocation8]  }
  0x59   :  { %902 = vmatmul.mubr.bf16.vlgmr.msra.gmra.mrb[0].mxu0 %v1812_v35  ;;  %943 = vmatmul.mubr.bf16.vlgmr.msra.gmra.mrb[0].mxu1 %v1812_v35  ;;  %s1277_s22 = sshll.u32 %s1753_s2, 4  ;;  %s1278_s22 = int_to_ptr.vmem [resolvable:$true] %s1277_s22 }
  0x5a   :  { %952 = vmatpush1.bf16.msra.mxu0 %v1493_v36  ;;  %993 = vmatpush1.bf16.msra.mxu1 %v1496_v37  ;;  %v1591_v36 = vld [vmem:[#allocation5 + $0x34] ss:$60 sps:$4 sm:$0xff]   ;;  %s1717_s23 = scalar_lea.vmem %s1278_s22, 1920  ;;  %p1722_p11 = scmp.lt.s32.totalorder %s1278_s22, %s1278_s22 }
  0x5b   :  { %953 = vmatprep.subr.bf16.mxu0 %v1501_v38  ;;  %994 = vmatprep.subr.bf16.mxu1 %v1504_v39  ;;  %v1589_v37 = vld [vmem:[#allocation5 + $0x30] ss:$60 sps:$4 sm:$0xff]   ;;  %v1592_v38 = vld [vmem:[#allocation5 + $0x38] ss:$60 sps:$4 sm:$0xff]   ;;  %v1751_v39 = vmov 0.0   ;;  %p1718_p10 = scmp.ne.s32.totalorder %s1278_s22, %s1717_s23  ;;  %p1723_p12 = scmp.lt.s32.totalorder %s1717_s23, %s1717_s23 }
  0x5c   :  { %983 = vmatprep.mubr.bf16.mxu0 %v1750_v0  ;;  %1024 = vmatprep.mubr.bf16.mxu1 %v1750_v0 }
  0x5d   :  { %p1724_p13 = por %p1723_p12, %p1722_p11 }
  0x5e   :  { %954 = vmatpush1.bf16.msra.mxu0 %v1499_v40  ;;  %995 = vmatpush1.bf16.msra.mxu1 %v1502_v41  ;;  %v1595_v40 = vld [vmem:[#allocation5 + $0xac] ss:$60 sps:$4 sm:$0xff]  }
  0x5f   :  { %955 = vmatprep.subr.bf16.mxu0 %v1507_v42  ;;  %996 = vmatprep.subr.bf16.mxu1 %v1510_v43  ;;  %v1593_v41 = vld [vmem:[#allocation5 + $0xa8] ss:$60 sps:$4 sm:$0xff]   ;;  %v1596_v42 = vld [vmem:[#allocation5 + $0xb0] ss:$60 sps:$4 sm:$0xff]   ;;  %p1725_p0 = pnand %p1724_p13, %p1718_p10 }
  0x60   :  { %v1599_v43 = vld [vmem:[#allocation5 + $0x124] ss:$60 sps:$4 sm:$0xff]  }
  0x62   :  { %956 = vmatpush1.bf16.msra.mxu0 %v1505_v44  ;;  %997 = vmatpush1.bf16.msra.mxu1 %v1508_v45  ;;  %v1597_v44 = vld [vmem:[#allocation5 + $0x120] ss:$60 sps:$4 sm:$0xff]   ;;  %v1600_v45 = vld [vmem:[#allocation5 + $0x128] ss:$60 sps:$4 sm:$0xff]  }
  0x63   :  { %957 = vmatprep.subr.bf16.mxu0 %v1513_v46  ;;  %998 = vmatprep.subr.bf16.mxu1 %v1516_v47  ;;  %v1603_v46 = vld [vmem:[#allocation5 + $0x19c] ss:$60 sps:$4 sm:$0xff]  }
  0x64   :  { %v1601_v47 = vld [vmem:[#allocation5 + $0x198] ss:$60 sps:$4 sm:$0xff]  }
  0x66   :  { %958 = vmatpush1.bf16.msra.mxu0 %v1511_v48  ;;  %999 = vmatpush1.bf16.msra.mxu1 %v1514_v49  ;;  %v1604_v48 = vld [vmem:[#allocation5 + $0x1a0] ss:$60 sps:$4 sm:$0xff]   ;;  %v1607_v49 = vld [vmem:[#allocation5 + $0x214] ss:$60 sps:$4 sm:$0xff]  }
  0x67   :  { %959 = vmatprep.subr.bf16.mxu0 %v1519_v50  ;;  %1000 = vmatprep.subr.bf16.mxu1 %v1522_v51  ;;  %v1605_v50 = vld [vmem:[#allocation5 + $0x210] ss:$60 sps:$4 sm:$0xff]  }
  0x68   :  { %v1611_v51 = vld [vmem:[#allocation5 + $0x28c] ss:$60 sps:$4 sm:$0xff]  }
  0x6a   :  { %960 = vmatpush1.bf16.msra.mxu0 %v1517_v52  ;;  %1001 = vmatpush1.bf16.msra.mxu1 %v1520_v53  ;;  %v1609_v52 = vld [vmem:[#allocation5 + $0x288] ss:$60 sps:$4 sm:$0xff]   ;;  %v1612_v53 = vld [vmem:[#allocation5 + $0x290] ss:$60 sps:$4 sm:$0xff]  }
  0x6b   :  { %961 = vmatprep.subr.bf16.mxu0 %v1525_v54  ;;  %1002 = vmatprep.subr.bf16.mxu1 %v1528_v55  ;;  %v1615_v54 = vld [vmem:[#allocation5 + $0x304] ss:$60 sps:$4 sm:$0xff]  }
  0x6c   :  { %v1613_v55 = vld [vmem:[#allocation5 + $0x300] ss:$60 sps:$4 sm:$0xff]  }
  0x6e   :  { %962 = vmatpush1.bf16.msra.mxu0 %v1523_v56  ;;  %1003 = vmatpush1.bf16.msra.mxu1 %v1526_v57  ;;  %v1616_v56 = vld [vmem:[#allocation5 + $0x308] ss:$60 sps:$4 sm:$0xff]   ;;  %v1619_v57 = vld [vmem:[#allocation5 + $0x37c] ss:$60 sps:$4 sm:$0xff]  }
  0x6f   :  { %963 = vmatprep.subr.bf16.mxu0 %v1531_v58  ;;  %1004 = vmatprep.subr.bf16.mxu1 %v1534_v59  ;;  %v1617_v58 = vld [vmem:[#allocation5 + $0x378] ss:$60 sps:$4 sm:$0xff]   ;;  %v1620_v59 = vld [vmem:[#allocation5 + $0x380] ss:$60 sps:$4 sm:$0xff]  }
  0x72   :  { %964 = vmatpush1.bf16.msra.mxu0 %v1529_v60  ;;  %1005 = vmatpush1.bf16.msra.mxu1 %v1532_v61  ;;  %v186_v60 = vlaneseq }
  0x73   :  { %965 = vmatprep.subr.bf16.mxu0 %v1537_v62  ;;  %1006 = vmatprep.subr.bf16.mxu1 %v1540_v63 }
  0x74   :  { %v1827_v61 = vshrl.u32 %v186_v60, 7 }
  0x76   :  { %966 = vmatpush1.bf16.msra.mxu0 %v1535_v1  ;;  %1007 = vmatpush1.bf16.msra.mxu1 %v1538_v2  ;;  %v188_v62 = vsub.s32 0, %v1827_v61  ;;  %v196_v63 = vsub.s32 2, %v1827_v61  ;;  %v182_v1 = vld [vmem:[#allocation7] sm:$0xff]  ;;  %v192_v2 = vsub.s32 1, %v1827_v61 }
  0x77   :  { %1033 = vmatprep.subr.bf16.mxu0 %v1543_v3  ;;  %1074 = vmatprep.subr.bf16.mxu1 %v1546_v4  ;;  %v200_v3 = vsub.s32 3, %v1827_v61 }
  0x78   :  { %v189_v4 = vrot.slane %v182_v1, %v188_v62 }
  0x79   :  { %984 = vmatmul.mubr.bf16.vlgmr.msra.gmra.mrb[4].mxu0 %v1812_v35  ;;  %1025 = vmatmul.mubr.bf16.vlgmr.msra.gmra.mrb[4].mxu1 %v1812_v35 }
  0x7a   :  { %1034 = vmatpush1.bf16.msra.mxu0 %v1541_v5  ;;  %1075 = vmatpush1.bf16.msra.mxu1 %v1544_v6  ;;  %v197_v5 = vrot.slane %v182_v1, %v196_v63  ;;  %v201_v6 = vrot.slane %v182_v1, %v200_v3 }
  0x7b   :  { %1035 = vmatprep.subr.bf16.mxu0 %v1549_v7  ;;  %1076 = vmatprep.subr.bf16.mxu1 %v1552_v8 }
  0x7c   :  { %1065 = vmatprep.mubr.bf16.mxu0 %v1750_v0  ;;  %1106 = vmatprep.mubr.bf16.mxu1 %v1750_v0 }
  0x7e   :  { %1036 = vmatpush1.bf16.msra.mxu0 %v1547_v9  ;;  %1077 = vmatpush1.bf16.msra.mxu1 %v1550_v10 }
  0x7f   :  { %1037 = vmatprep.subr.bf16.mxu0 %v1555_v11  ;;  %1078 = vmatprep.subr.bf16.mxu1 %v1558_v12 }
  0x82   :  { %1038 = vmatpush1.bf16.msra.mxu0 %v1553_v13  ;;  %1079 = vmatpush1.bf16.msra.mxu1 %v1556_v14 }
  0x83   :  { %1039 = vmatprep.subr.bf16.mxu0 %v1561_v15  ;;  %1080 = vmatprep.subr.bf16.mxu1 %v1564_v16 }
  0x86   :  { %1040 = vmatpush1.bf16.msra.mxu0 %v1559_v17  ;;  %1081 = vmatpush1.bf16.msra.mxu1 %v1562_v18 }
  0x87   :  { %1041 = vmatprep.subr.bf16.mxu0 %v1567_v19  ;;  %1082 = vmatprep.subr.bf16.mxu1 %v1570_v20 }
  0x8a   :  { %1042 = vmatpush1.bf16.msra.mxu0 %v1565_v21  ;;  %1083 = vmatpush1.bf16.msra.mxu1 %v1568_v22 }
  0x8b   :  { %1043 = vmatprep.subr.bf16.mxu0 %v1573_v23  ;;  %1084 = vmatprep.subr.bf16.mxu1 %v1576_v24 }
  0x8e   :  { %1044 = vmatpush1.bf16.msra.mxu0 %v1571_v25  ;;  %1085 = vmatpush1.bf16.msra.mxu1 %v1574_v26 }
  0x8f   :  { %1045 = vmatprep.subr.bf16.mxu0 %v1579_v27  ;;  %1086 = vmatprep.subr.bf16.mxu1 %v1582_v28 }
  0x92   :  { %1046 = vmatpush1.bf16.msra.mxu0 %v1577_v29  ;;  %1087 = vmatpush1.bf16.msra.mxu1 %v1580_v30 }
  0x93   :  { %1047 = vmatprep.subr.bf16.mxu0 %v1585_v31  ;;  %1088 = vmatprep.subr.bf16.mxu1 %v1588_v32 }
  0x96   :  { %1048 = vmatpush1.bf16.msra.mxu0 %v1583_v33  ;;  %1089 = vmatpush1.bf16.msra.mxu1 %v1586_v34 }
  0x97   :  { %1115 = vmatprep.subr.bf16.mxu0 %v1591_v36  ;;  %1416 = vmatprep.subr.bf16.mxu1 %v1751_v39  ;;  %v204_v36 = vsub.s32 4, %v1827_v61 }
  0x99   :  { %1066 = vmatmul.mubr.bf16.vlgmr.msra.gmra.mrb[8].mxu0 %v1812_v35  ;;  %1107 = vmatmul.mubr.bf16.vlgmr.msra.gmra.mrb[8].mxu1 %v1812_v35 }
  0x9a   :  { %1116 = vmatpush1.bf16.msra.mxu0 %v1589_v37  ;;  %1417 = vmatpush3.bf16.msra.mxu1 %v1592_v38  ;;  %v212_v37 = vsub.s32 6, %v1827_v61  ;;  %v208_v38 = vsub.s32 5, %v1827_v61 }
  0x9b   :  { %1117 = vmatprep.subr.bf16.mxu0 %v1595_v40  ;;  %1418 = vmatprep.subr.bf16.mxu1 %v1751_v39  ;;  %v205_v40 = vrot.slane %v182_v1, %v204_v36 }
  0x9c   :  { %1147 = vmatprep.mubr.bf16.mxu0 %v1750_v0  ;;  %1432 = vmatprep.mubr.msk.bf16.mxu1 %vm1752_vm0, %v1751_v39  ;;  %v1608_v0 = vld [vmem:[#allocation5 + $0x218] ss:$60 sps:$4 sm:$0xff]  }
  0x9e   :  { %1118 = vmatpush1.bf16.msra.mxu0 %v1593_v41  ;;  %1419 = vmatpush3.bf16.msra.mxu1 %v1596_v42  ;;  %v213_v41 = vrot.slane %v182_v1, %v212_v37  ;;  %v209_v42 = vrot.slane %v182_v1, %v208_v38 }
  0x9f   :  { %1119 = vmatprep.subr.bf16.mxu0 %v1599_v43  ;;  %1420 = vmatprep.subr.bf16.mxu1 %v1751_v39 }
  0xa2   :  { %1120 = vmatpush1.bf16.msra.mxu0 %v1597_v44  ;;  %1421 = vmatpush3.bf16.msra.mxu1 %v1600_v45 }
  0xa3   :  { %1121 = vmatprep.subr.bf16.mxu0 %v1603_v46  ;;  %1422 = vmatprep.subr.bf16.mxu1 %v1751_v39 }
  0xa6   :  { %1122 = vmatpush1.bf16.msra.mxu0 %v1601_v47  ;;  %1423 = vmatpush3.bf16.msra.mxu1 %v1604_v48 }
  0xa7   :  { %1123 = vmatprep.subr.bf16.mxu0 %v1607_v49  ;;  %1424 = vmatprep.subr.bf16.mxu1 %v1751_v39 }
  0xaa   :  { %1124 = vmatpush1.bf16.msra.mxu0 %v1605_v50  ;;  %1425 = vmatpush3.bf16.msra.mxu1 %v1608_v0 }
  0xab   :  { %1125 = vmatprep.subr.bf16.mxu0 %v1611_v51  ;;  %1426 = vmatprep.subr.bf16.mxu1 %v1751_v39 }
  0xae   :  { %1126 = vmatpush1.bf16.msra.mxu0 %v1609_v52  ;;  %1427 = vmatpush3.bf16.msra.mxu1 %v1612_v53 }
  0xaf   :  { %1127 = vmatprep.subr.bf16.mxu0 %v1615_v54  ;;  %1428 = vmatprep.subr.bf16.mxu1 %v1751_v39 }
  0xb2   :  { %1128 = vmatpush1.bf16.msra.mxu0 %v1613_v55  ;;  %1429 = vmatpush3.bf16.msra.mxu1 %v1616_v56 }
  0xb3   :  { %1129 = vmatprep.subr.bf16.mxu0 %v1619_v57  ;;  %1430 = vmatprep.subr.bf16.mxu1 %v1751_v39  ;;  %v216_v39 = vsub.s32 7, %v1827_v61 }
  0xb5   :  { %v217_v43 = vrot.slane %v182_v1, %v216_v39 }
  0xb6   :  { %1130 = vmatpush1.bf16.msra.mxu0 %v1617_v58  ;;  %1431 = vmatpush3.bf16.msra.mxu1 %v1620_v59 }
  0xb9   :  { %1148 = vmatmul.mubr.bf16.vlgmr.msra.gmra.mrb[12].mxu0 %v1812_v35  ;;  %1433 = vmatmul.mubr.bf16.vlgmr.msra.gmra.mrb[12].mxu1 %v1812_v35  ;;  %v193_v35 = vrot.slane %v182_v1, %v192_v2 }
 0x12c   :  { %v903_v7 = vpop.f32.mrb[0].mxu0  ;;  %v944_v8 = vpop.f32.mrb[0].mxu1 }
 0x12d   :  { %v904_v9 = vadd.f32 %v903_v7, %v189_v4  ;;  %v945_v10 = vadd.f32 %v944_v8, %v197_v5  ;;  %v905_v11 = vpop.f32.mrb[1].mxu0  ;;  %v946_v12 = vpop.f32.mrb[1].mxu1 }
 0x12e   :  { %v906_v13 = vadd.f32 %v905_v11, %v193_v35  ;;  %v947_v14 = vadd.f32 %v946_v12, %v201_v6  ;;  %v907_v15 = vpop.f32.mrb[2].mxu0  ;;  %v948_v16 = vpop.f32.mrb[2].mxu1  ;;  %v183_v12 = vld [vmem:[#allocation7 + $0x8] sm:$0xff] }
 0x12f   :  { %v1196_v17 = vmul.f32 0.5, %v904_v9  ;;  %v1198_v18 = vmul.f32 0.5, %v945_v10  ;;  %v908_v19 = vpop.f32.mrb[3].mxu0  ;;  %v949_v20 = vpop.f32.mrb[3].mxu1  ;;  %v225_v15 = vrot.slane %v183_v12, %v192_v2  ;;  %v233_v16 = vrot.slane %v183_v12, %v200_v3 }
 0x130   :  { %v1197_v21 = vmul.f32 0.5, %v906_v13  ;;  %v1199_v22 = vmul.f32 0.5, %v947_v14  ;;  %v221_v13 = vrot.slane %v183_v12, %v188_v62  ;;  %v229_v14 = vrot.slane %v183_v12, %v196_v63 }
 0x131   :  { %1621 = vtanh.f32 %v1196_v17 }
 0x132   :  { %1623 = vtanh.f32 %v1198_v18 }
 0x133   :  { %1625 = vtanh.f32 %v1197_v21 }
 0x134   :  { %1627 = vtanh.f32 %v1199_v22 }
 0x13b   :  { %v1622_v23 = vpop.eup %1621 }
 0x13c   :  { %v1624_v24 = vpop.eup %1623  ;;  %v1226_v25 = vmul.f32 0.5, %v1622_v23 }
 0x13d   :  { %v1626_v26 = vpop.eup %1625  ;;  %v1228_v27 = vmul.f32 0.5, %v1624_v24 }
 0x13e   :  { %v1628_v28 = vpop.eup %1627  ;;  %v1241_v29 = vadd.f32 0.5, %v1226_v25  ;;  %v1227_v30 = vmul.f32 0.5, %v1626_v26 }
 0x13f   :  { %v1243_v31 = vadd.f32 0.5, %v1228_v27  ;;  %v1229_v32 = vmul.f32 0.5, %v1628_v28 }
 0x140   :  { %1256 = vst [vmem:[#allocation8] sm:$0xff] %v1241_v29  ;;  %v1242_v33 = vadd.f32 0.5, %v1227_v30 }
 0x141   :  { %1258 = vst [vmem:[#allocation8 + $0x10] sm:$0xff] %v1243_v31  ;;  %v1244_v34 = vadd.f32 0.5, %v1229_v32 }
 0x142   :  { %1257 = vst [vmem:[#allocation8 + $0x8] sm:$0xff] %v1242_v33 }
 0x143   :  { %1259 = vst [vmem:[#allocation8 + $0x18] sm:$0xff] %v1244_v34 }
 0x14c   :  { %v985_v44 = vpop.f32.mrb[4].mxu0  ;;  %v1026_v45 = vpop.f32.mrb[4].mxu1 }
 0x14d   :  { %v986_v46 = vadd.f32 %v985_v44, %v205_v40  ;;  %v1027_v47 = vadd.f32 %v1026_v45, %v213_v41  ;;  %v987_v48 = vpop.f32.mrb[5].mxu0  ;;  %v1028_v49 = vpop.f32.mrb[5].mxu1  ;;  %v237_v45 = vrot.slane %v183_v12, %v204_v36 }
 0x14e   :  { %v988_v50 = vadd.f32 %v987_v48, %v209_v42  ;;  %v1029_v0 = vadd.f32 %v1028_v49, %v217_v43  ;;  %v989_v51 = vpop.f32.mrb[6].mxu0  ;;  %v1030_v52 = vpop.f32.mrb[6].mxu1 }
 0x14f   :  { %v1200_v53 = vmul.f32 0.5, %v986_v46  ;;  %v1202_v54 = vmul.f32 0.5, %v1027_v47  ;;  %v990_v55 = vpop.f32.mrb[7].mxu0  ;;  %v1031_v56 = vpop.f32.mrb[7].mxu1  ;;  %v245_v46 = vrot.slane %v183_v12, %v212_v37  ;;  %v241_v47 = vrot.slane %v183_v12, %v208_v38 }
 0x150   :  { %v1201_v57 = vmul.f32 0.5, %v988_v50  ;;  %v1203_v58 = vmul.f32 0.5, %v1029_v0 }
 0x151   :  { %1629 = vtanh.f32 %v1200_v53 }
 0x152   :  { %1631 = vtanh.f32 %v1202_v54 }
 0x153   :  { %1633 = vtanh.f32 %v1201_v57 }
 0x154   :  { %1635 = vtanh.f32 %v1203_v58 }
 0x15b   :  { %v1630_v59 = vpop.eup %1629 }
 0x15c   :  { %v1632_v60 = vpop.eup %1631  ;;  %v1230_v1 = vmul.f32 0.5, %v1630_v59 }
 0x15d   :  { %v1634_v4 = vpop.eup %1633  ;;  %v1232_v5 = vmul.f32 0.5, %v1632_v60 }
 0x15e   :  { %v1636_v35 = vpop.eup %1635  ;;  %v1245_v6 = vadd.f32 0.5, %v1230_v1  ;;  %v1231_v7 = vmul.f32 0.5, %v1634_v4 }
 0x15f   :  { %v1247_v8 = vadd.f32 0.5, %v1232_v5  ;;  %v1233_v9 = vmul.f32 0.5, %v1636_v35 }
 0x160   :  { %1260 = vst [vmem:[#allocation8 + $0x20] sm:$0xff] %v1245_v6  ;;  %v1246_v10 = vadd.f32 0.5, %v1231_v7 }
 0x161   :  { %1262 = vst [vmem:[#allocation8 + $0x30] sm:$0xff] %v1247_v8  ;;  %v1248_v11 = vadd.f32 0.5, %v1233_v9 }
 0x162   :  { %1261 = vst [vmem:[#allocation8 + $0x28] sm:$0xff] %v1246_v10 }
 0x163   :  { %1263 = vst [vmem:[#allocation8 + $0x38] sm:$0xff] %v1248_v11 }
 0x16c   :  { %v1067_v17 = vpop.f32.mrb[8].mxu0  ;;  %v1108_v18 = vpop.f32.mrb[8].mxu1 }
 0x16d   :  { %v1068_v19 = vadd.f32 %v1067_v17, %v221_v13  ;;  %v1109_v20 = vadd.f32 %v1108_v18, %v229_v14  ;;  %v1069_v21 = vpop.f32.mrb[9].mxu0  ;;  %v1110_v22 = vpop.f32.mrb[9].mxu1 }
 0x16e   :  { %v1070_v23 = vadd.f32 %v1069_v21, %v225_v15  ;;  %v1111_v24 = vadd.f32 %v1110_v22, %v233_v16  ;;  %v1071_v25 = vpop.f32.mrb[10].mxu0  ;;  %v1112_v26 = vpop.f32.mrb[10].mxu1 }
 0x16f   :  { %v1204_v62 = vmul.f32 0.5, %v1068_v19  ;;  %v1206_v27 = vmul.f32 0.5, %v1109_v20  ;;  %v1072_v28 = vpop.f32.mrb[11].mxu0  ;;  %v1113_v63 = vpop.f32.mrb[11].mxu1 }
 0x170   :  { %v1205_v29 = vmul.f32 0.5, %v1070_v23  ;;  %v1207_v30 = vmul.f32 0.5, %v1111_v24 }
 0x171   :  { %1637 = vtanh.f32 %v1204_v62 }
 0x172   :  { %1639 = vtanh.f32 %v1206_v27 }
 0x173   :  { %1641 = vtanh.f32 %v1205_v29 }
 0x174   :  { %1643 = vtanh.f32 %v1207_v30 }
 0x17b   :  { %v1638_v2 = vpop.eup %1637 }
 0x17c   :  { %v1640_v3 = vpop.eup %1639  ;;  %v1234_v31 = vmul.f32 0.5, %v1638_v2 }
 0x17d   :  { %v1642_v32 = vpop.eup %1641  ;;  %v1236_v33 = vmul.f32 0.5, %v1640_v3 }
 0x17e   :  { %v1644_v34 = vpop.eup %1643  ;;  %v1249_v39 = vadd.f32 0.5, %v1234_v31  ;;  %v1235_v40 = vmul.f32 0.5, %v1642_v32 }
 0x17f   :  { %v1251_v41 = vadd.f32 0.5, %v1236_v33  ;;  %v1237_v42 = vmul.f32 0.5, %v1644_v34 }
 0x180   :  { %1264 = vst [vmem:[#allocation8 + $0x40] sm:$0xff] %v1249_v39  ;;  %v1250_v43 = vadd.f32 0.5, %v1235_v40 }
 0x181   :  { %1266 = vst [vmem:[#allocation8 + $0x50] sm:$0xff] %v1251_v41  ;;  %v1252_v44 = vadd.f32 0.5, %v1237_v42 }
 0x182   :  { %1265 = vst [vmem:[#allocation8 + $0x48] sm:$0xff] %v1250_v43 }
 0x183   :  { %1267 = vst [vmem:[#allocation8 + $0x58] sm:$0xff] %v1252_v44 }
 0x18c   :  { %v1149_v48 = vpop.f32.mrb[12].mxu0  ;;  %v1190_v49 = vpop.f32.mrb[12].mxu1 }
 0x18d   :  { %v1150_v50 = vadd.f32 %v1149_v48, %v237_v45  ;;  %v1191_v0 = vadd.f32 %v1190_v49, %v245_v46  ;;  %v1151_v51 = vpop.f32.mrb[13].mxu0  ;;  %v1434_v52 = vpop.f32.mrb[13].mxu1 }
 0x18e   :  { %v1152_v53 = vadd.f32 %v1151_v51, %v241_v47  ;;  %v1153_v54 = vpop.f32.mrb[14].mxu0  ;;  %v1193_v55 = vpop.f32.mrb[14].mxu1 }
 0x18f   :  { %v1208_v56 = vmul.f32 0.5, %v1150_v50  ;;  %v1210_v57 = vmul.f32 0.5, %v1191_v0  ;;  %v1154_v58 = vpop.f32.mrb[15].mxu0  ;;  %v1435_v59 = vpop.f32.mrb[15].mxu1 }
 0x190   :  { %v1209_v36 = vmul.f32 0.5, %v1152_v53 }
 0x191   :  { %1645 = vtanh.f32 %v1208_v56 }
 0x192   :  { %1647 = vtanh.f32 %v1210_v57 }
 0x193   :  { %1649 = vtanh.f32 %v1209_v36 }
 0x19b   :  { %v1646_v37 = vpop.eup %1645 }
 0x19c   :  { %v1648_v61 = vpop.eup %1647  ;;  %v1238_v38 = vmul.f32 0.5, %v1646_v37 }
 0x19d   :  { %v1650_v60 = vpop.eup %1649  ;;  %v1240_v1 = vmul.f32 0.5, %v1648_v61 }
 0x19e   :  { %v1253_v4 = vadd.f32 0.5, %v1238_v38  ;;  %v1239_v5 = vmul.f32 0.5, %v1650_v60 }
 0x19f   :  { %v1255_v35 = vadd.f32 0.5, %v1240_v1 }
 0x1a0   :  { %1268 = vst [vmem:[#allocation8 + $0x60] sm:$0xff] %v1253_v4  ;;  %v1254_v6 = vadd.f32 0.5, %v1239_v5 }
 0x1a1   :  { %1270 = vst [vmem:[#allocation8 + $0x70] sm:$0xff] %v1255_v35 }
 0x1a2   :  { %1269 = vst [vmem:[#allocation8 + $0x68] sm:$0xff] %v1254_v6 }
 0x1a3   :  { %1728 = shalt.err (!%p1725_p0)
}
 0x1a4   :  { %s1729_s26 = scalar_lea.hbm %s1880_s3, 1920 }
 0x1a5   :  { %p1730_p1 = scmp.ne.s32.totalorder %s1880_s3, %s1729_s26  ;;  %p1733_p2 = scmp.lt.u32.totalorder %s1729_s26, %s1880_s3 }
 0x1a7   :  { %p1735_p3 = pnand %p1733_p2, %p1730_p1 }
 0x1a9   :  { %1738 = shalt.err (!%p1735_p3)
}
 0x1aa   :  { %1280 = dma.vmem_to_hbm [thread:$0]  %s1278_s22, 1920, %s1880_s3, [#allocation4]  }
 0x1ab   :  { %1743 = dma.done.wait [#allocation4], 1920  }
 0x1ac   :  { %1744 = vsyncadd [#allocation4], 4294965376 }
 0x1ad   :  { %1284 = vsyncpa [#allocation3], 1 }
 0x1ae   :  { %1285 = vsyncpa [#allocation6], 1 }
 0x1af   :  { %1286 = vsyncpa [#allocation4], 1 }

</bundles_post_ra>
